<compile_context>
chip_gen: v7x
topology: tpu7x:2x2x1
jax: 0.10.0
libtpu: 0.0.40
codegen_flags: <defaults>
</compile_context>

<pallas_src>
import functools

import jax
import jax.numpy as jnp
from jax.experimental import pallas as pl
from jax.experimental.pallas import tpu as pltpu

NEG_SLOPE = 0.01          # nn.LeakyReLU() default
_LANE = 128
_MAX_TILE_L = 8192


def _leaky_relu(v):
    return jnp.where(v > 0, v, NEG_SLOPE * v)


def _vmem_capacity_bytes():
    """Per-TensorCore VMEM capacity (generation-aware), with a safe fallback."""
    try:
        return int(pltpu.get_tpu_info().vmem_capacity_bytes)
    except Exception:
        return 64 * 1024 * 1024  # conservative: v7x per-TC size


def _pick_tile_l(lp, per_l_bytes, fixed_bytes, budget):
    """Largest lane-aligned length tile dividing lp that fits the VMEM budget."""
    candidates = []
    if lp <= _MAX_TILE_L:
        candidates.append(lp)
    candidates += [t for t in (8192, 4096, 2048, 1024, 512, 256, 128) if t < lp]
    for t in candidates:
        if lp % t == 0 and fixed_bytes + per_l_bytes * t <= budget:
            return t
    return _LANE  # lp is always a multiple of 128


def _convblock_kernel(x_ref, halo_ref, w_ref, b_ref, o_ref, *, compute_dtype):
    # x_ref   : (1, Cin, TL)    current length tile (NCL: length on lanes)
    # halo_ref: (1, 1, Cin, 2)  [..., 0] = column just left of the tile,
    #                           [..., 1] = column just right (zeros at sequence ends)
    # w_ref   : (Cout, 3*Cin)   conv taps fused along the contraction axis (k-major)
    # b_ref   : (Cout, 1)       f32 bias
    # o_ref   : (1, Cout, TL)   lane-dense output tile
    tl = x_ref.shape[2]
    cd = compute_dtype

    # LeakyReLU is applied in-kernel (before the conv), including on the raw halos.
    xin = _leaky_relu(x_ref[0])          # (Cin, TL)
    halo = _leaky_relu(halo_ref[0, 0])   # (Cin, 2)
    lh = halo[:, 0:1]
    rh = halo[:, 1:2]

    # Taps x[l-1], x[l], x[l+1], stacked along sublanes -> one deep MXU contraction.
    x_prev = jnp.concatenate([lh, xin[:, : tl - 1]], axis=1)
    x_next = jnp.concatenate([xin[:, 1:], rh], axis=1)
    xs = jnp.concatenate([x_prev, xin, x_next], axis=0).astype(cd)   # (3*Cin, TL)

    acc = jnp.dot(w_ref[...], xs, preferred_element_type=jnp.float32)  # (Cout, TL) f32
    o_ref[0] = (acc + b_ref[...]).astype(o_ref.dtype)


def conv_block(x_ncl, weight_oik, bias, *, tile_l=None,
               compute_dtype=jnp.bfloat16, io_dtype=None):
    """LeakyReLU -> Conv1d(k=3, s=1, p=1).  x_ncl: (N, Cin, L) -> (N, Cout, L)."""
    N, Cin, L = x_ncl.shape
    Cout, Cin_w, K = weight_oik.shape
    assert Cin_w == Cin and K == 3

    # Optional bf16 activation I/O (biggest lever for this HBM-bound kernel).
    out_dtype = io_dtype if io_dtype is not None else x_ncl.dtype
    if io_dtype is not None and x_ncl.dtype != io_dtype:
        x_ncl = x_ncl.astype(io_dtype)
    io_bytes = jnp.dtype(x_ncl.dtype).itemsize

    # Pad L to a lane multiple so every tile is 128-aligned (padding is zeros, which
    # matches Conv1d's zero padding; the padded tail is sliced off the output).
    Lp = ((L + _LANE - 1) // _LANE) * _LANE
    if Lp != L:
        x_ncl = jnp.pad(x_ncl, ((0, 0), (0, 0), (0, Lp - L)))

    # Generation-aware VMEM budget (v7x: 64 MiB/TC; v5e/v6e: 128 MiB).
    vmem_cap = _vmem_capacity_bytes()
    budget = (vmem_cap * 3) // 5
    per_l_bytes = 2 * (Cin + Cout) * io_bytes + (3 * Cin + Cout) * 4   # dbl-buf I/O + f32 temps
    fixed_bytes = 2 * (3 * Cin * Cout * 2 + Cout * 4 + 2 * Cin * io_bytes)
    if tile_l is None:
        TL = _pick_tile_l(Lp, per_l_bytes, fixed_bytes, budget)
    else:
        TL = tile_l
        assert TL % _LANE == 0 and Lp % TL == 0, (
            f"tile_l={TL} must be a multiple of 128 dividing padded length {Lp}")
    NT = Lp // TL

    # Per-tile halo columns (raw x; LeakyReLU applied in-kernel), merged into one
    # (N, NT, Cin, 2) array -> a single tiny DMA per grid step.  Built from strided
    # slices: no extra full-array pass over x.
    zero_col = jnp.zeros((N, Cin, 1), x_ncl.dtype)
    if NT == 1:
        lcols = zero_col
        rcols = zero_col
    else:
        lcols = jnp.concatenate([zero_col, x_ncl[:, :, TL - 1:Lp - 1:TL]], axis=2)
        rcols = jnp.concatenate([x_ncl[:, :, TL::TL], zero_col], axis=2)
    halos = jnp.transpose(jnp.stack([lcols, rcols], axis=-1), (0, 2, 1, 3))  # (N,NT,Cin,2)

    # (Cout, Cin, 3) -> (Cout, 3*Cin), k-major, matching the in-kernel tap stack.
    w_fused = jnp.transpose(weight_oik, (0, 2, 1)).reshape(Cout, 3 * Cin)
    w_fused = w_fused.astype(compute_dtype)
    b_col = bias.astype(jnp.float32).reshape(Cout, 1)

    cost = pl.CostEstimate(
        flops=2 * 3 * Cin * Cout * Lp * N,
        transcendentals=0,
        bytes_accessed=(Cin + Cout) * Lp * N * io_bytes + 3 * Cin * Cout * 2 + Cout * 4,
    )

    kernel = functools.partial(_convblock_kernel, compute_dtype=compute_dtype)

    out = pl.pallas_call(
        kernel,
        out_shape=jax.ShapeDtypeStruct((N, Cout, Lp), out_dtype),
        grid_spec=pltpu.PrefetchScalarGridSpec(
            num_scalar_prefetch=0,
            grid=(N, NT),
            in_specs=[
                pl.BlockSpec((1, Cin, TL), lambda n, lt: (n, 0, lt)),
                pl.BlockSpec((1, 1, Cin, 2), lambda n, lt: (n, lt, 0, 0)),
                pl.BlockSpec((Cout, 3 * Cin), lambda n, lt: (0, 0)),
                pl.BlockSpec((Cout, 1), lambda n, lt: (0, 0)),
            ],
            out_specs=pl.BlockSpec((1, Cout, TL), lambda n, lt: (n, 0, lt)),
        ),
        compiler_params=pltpu.CompilerParams(
            dimension_semantics=("parallel", "parallel"),
            vmem_limit_bytes=(vmem_cap * 3) // 4,
        ),
        cost_estimate=cost,
    )(x_ncl, halos, w_fused, b_col)

    if Lp != L:
        out = out[:, :, :L]
    return out


def conv_block_ref(x_ncl, weight_oik, bias):
    """Pure-JAX reference of the PyTorch forward (for validation)."""
    xin = jnp.where(x_ncl > 0, x_ncl, NEG_SLOPE * x_ncl)
    out = jax.lax.conv_general_dilated(
        xin, weight_oik,
        window_strides=(1,), padding=((1, 1),),
        dimension_numbers=("NCH", "OIH", "NCH"))
    return out + bias[None, :, None]


if __name__ == "__main__":
    key = jax.random.PRNGKey(0)
    k_x, k_w, k_b, k_x2 = jax.random.split(key, 4)

    N, Cin, Cout = 2, 4, 8
    weight = jax.random.normal(k_w, (Cout, Cin, 3), dtype=jnp.float32) * 0.1
    bias = jax.random.normal(k_b, (Cout,), dtype=jnp.float32) * 0.1

    # Case 1: tiny sequence (L=16) -> padded to one 128-lane tile internally.
    x1 = jax.random.normal(k_x, (N, Cin, 16), dtype=jnp.float32)
    ref1 = conv_block_ref(x1, weight, bias)

    out1 = jax.block_until_ready(conv_block(x1, weight, bias))       # bf16 MXU path
    assert out1.shape == (N, Cout, 16) and out1.dtype == x1.dtype
    assert jnp.allclose(out1, ref1, atol=2e-2, rtol=2e-2)

    out1_f32 = jax.block_until_ready(
        conv_block(x1, weight, bias, compute_dtype=jnp.float32))      # exact f32 check
    assert jnp.allclose(out1_f32, ref1, atol=1e-5, rtol=1e-5)

    # Case 2: multi-tile length (forced TL=128, 2 tiles) -> exercises the
    # cross-tile halo path.
    x2 = jax.random.normal(k_x2, (N, Cin, 256), dtype=jnp.float32)
    ref2 = conv_block_ref(x2, weight, bias)
    out2 = jax.block_until_ready(conv_block(x2, weight, bias, tile_l=128))
    assert out2.shape == (N, Cout, 256)
    assert jnp.allclose(out2, ref2, atol=2e-2, rtol=2e-2)

    # Case 3: bf16 activation I/O (halves HBM traffic for this mem-bound kernel).
    out3 = jax.block_until_ready(conv_block(x2, weight, bias, io_dtype=jnp.bfloat16))
    assert out3.dtype == jnp.bfloat16
    assert jnp.allclose(out3.astype(jnp.float32), ref2, atol=5e-2, rtol=5e-2)

    print("KERNEL_OK")
</pallas_src>

<mosaic_0001>
module attributes {stable_mosaic.version = 11 : i64} {
  func.func @_convblock_kernel(%arg0: i32, %arg1: i32, %arg2: memref<1x4x128xf32, #tpu.memory_space<vmem>>, %arg3: memref<1x1x4x2xf32, #tpu.memory_space<vmem>>, %arg4: memref<8x12xbf16, #tpu.memory_space<vmem>>, %arg5: memref<8x1xf32, #tpu.memory_space<vmem>>, %arg6: memref<1x8x128xf32, #tpu.memory_space<vmem>>) attributes {dimension_semantics = [#tpu.dimension_semantics<parallel>, #tpu.dimension_semantics<parallel>], iteration_bounds = array<i64: 2, 1>, scalar_prefetch = 0 : i64, scratch_operands = 0 : i64, tpu.core_type = #tpu.core_type<tc>, window_params = [{transform_indices = @transform_0, window_bounds = array<i64: 1, 4, 128>}, {transform_indices = @transform_1, window_bounds = array<i64: 1, 1, 4, 2>}, {pipeline_mode = #tpu.pipeline_mode<synchronous>, transform_indices = @transform_2, window_bounds = array<i64: 8, 12>}, {pipeline_mode = #tpu.pipeline_mode<synchronous>, transform_indices = @transform_3, window_bounds = array<i64: 8, 1>}, {transform_indices = @transform_4, window_bounds = array<i64: 1, 8, 128>}]} {
    %c0 = arith.constant 0 : index
    %c0_0 = arith.constant 0 : index
    %c0_1 = arith.constant 0 : index
    %0 = vector.load %arg2[%c0, %c0_0, %c0_1] : memref<1x4x128xf32, #tpu.memory_space<vmem>>, vector<1x4x128xf32>
    %1 = vector.shape_cast %0 : vector<1x4x128xf32> to vector<4x128xf32>
    %cst = arith.constant 0.000000e+00 : f32
    %2 = vector.broadcast %cst : f32 to vector<4x128xf32>
    %3 = arith.cmpf ogt, %1, %2 : vector<4x128xf32>
    %cst_2 = arith.constant 0.00999999977 : f32
    %4 = vector.broadcast %cst_2 : f32 to vector<4x128xf32>
    %5 = arith.mulf %4, %1 : vector<4x128xf32>
    %6 = arith.select %3, %1, %5 : vector<4x128xi1>, vector<4x128xf32>
    %c0_3 = arith.constant 0 : index
    %c0_4 = arith.constant 0 : index
    %c0_5 = arith.constant 0 : index
    %c0_6 = arith.constant 0 : index
    %7 = vector.load %arg3[%c0_3, %c0_4, %c0_5, %c0_6] : memref<1x1x4x2xf32, #tpu.memory_space<vmem>>, vector<1x1x4x2xf32>
    %8 = vector.shape_cast %7 : vector<1x1x4x2xf32> to vector<4x2xf32>
    %cst_7 = arith.constant 0.000000e+00 : f32
    %9 = vector.broadcast %cst_7 : f32 to vector<4x2xf32>
    %10 = arith.cmpf ogt, %8, %9 : vector<4x2xf32>
    %cst_8 = arith.constant 0.00999999977 : f32
    %11 = vector.broadcast %cst_8 : f32 to vector<4x2xf32>
    %12 = arith.mulf %11, %8 : vector<4x2xf32>
    %13 = arith.select %10, %8, %12 : vector<4x2xi1>, vector<4x2xf32>
    %14 = vector.extract_strided_slice %13 {offsets = [0, 0], sizes = [4, 1], strides = [1, 1]} : vector<4x2xf32> to vector<4x1xf32>
    %15 = vector.extract_strided_slice %13 {offsets = [0, 1], sizes = [4, 1], strides = [1, 1]} : vector<4x2xf32> to vector<4x1xf32>
    %16 = vector.extract_strided_slice %6 {offsets = [0, 0], sizes = [4, 127], strides = [1, 1]} : vector<4x128xf32> to vector<4x127xf32>
    %17 = tpu.concatenate %14, %16 in 1 : vector<4x1xf32>, vector<4x127xf32> -> vector<4x128xf32>
    %18 = vector.extract_strided_slice %6 {offsets = [0, 1], sizes = [4, 127], strides = [1, 1]} : vector<4x128xf32> to vector<4x127xf32>
    %19 = tpu.concatenate %18, %15 in 1 : vector<4x127xf32>, vector<4x1xf32> -> vector<4x128xf32>
    %20 = tpu.concatenate %17, %6, %19 in 0 : vector<4x128xf32>, vector<4x128xf32>, vector<4x128xf32> -> vector<12x128xf32>
    %21 = arith.truncf %20 : vector<12x128xf32> to vector<12x128xbf16>
    %c0_9 = arith.constant 0 : index
    %c0_10 = arith.constant 0 : index
    %22 = vector.load %arg4[%c0_9, %c0_10] : memref<8x12xbf16, #tpu.memory_space<vmem>>, vector<8x12xbf16>
    %cst_11 = arith.constant dense<0.000000e+00> : vector<8x128xf32>
    %23 = tpu.matmul %22, %21, %cst_11 {dimension_numbers = #tpu.dot_dimension_numbers<[1], [0], [0], [1], [0, 0, 1, 1], [], []>} : vector<8x12xbf16>, vector<12x128xbf16>, vector<8x128xf32> -> vector<8x128xf32>
    %c0_12 = arith.constant 0 : index
    %c0_13 = arith.constant 0 : index
    %24 = vector.load %arg5[%c0_12, %c0_13] : memref<8x1xf32, #tpu.memory_space<vmem>>, vector<8x1xf32>
    %25 = vector.broadcast %24 : vector<8x1xf32> to vector<8x128xf32>
    %26 = arith.addf %23, %25 : vector<8x128xf32>
    %c0_14 = arith.constant 0 : index
    %c0_15 = arith.constant 0 : index
    %c0_16 = arith.constant 0 : index
    %27 = vector.load %arg6[%c0_14, %c0_15, %c0_16] : memref<1x8x128xf32, #tpu.memory_space<vmem>>, vector<1x8x128xf32>
    %28 = vector.shape_cast %27 : vector<1x8x128xf32> to vector<8x128xf32>
    %29 = vector.shape_cast %26 : vector<8x128xf32> to vector<1x8x128xf32>
    tpu.vector_store %arg6[%c0_14, %c0_15, %c0_16], %29 {strides = array<i32>} : memref<1x8x128xf32, #tpu.memory_space<vmem>>, vector<1x8x128xf32>,
    return
  }
  func.func @transform_0(%arg0: i32, %arg1: i32) -> (i32, i32, i32) {
    %c0_i32 = arith.constant 0 : i32
    %c0_i32_0 = arith.constant 0 : i32
    return %arg0, %c0_i32, %arg1 : i32, i32, i32
  }
  func.func @transform_1(%arg0: i32, %arg1: i32) -> (i32, i32, i32, i32) {
    %c0_i32 = arith.constant 0 : i32
    %c0_i32_0 = arith.constant 0 : i32
    %c0_i32_1 = arith.constant 0 : i32
    return %arg0, %arg1, %c0_i32, %c0_i32_0 : i32, i32, i32, i32
  }
  func.func @transform_2(%arg0: i32, %arg1: i32) -> (i32, i32) {
    %c0_i32 = arith.constant 0 : i32
    %c0_i32_0 = arith.constant 0 : i32
    %c0_i32_1 = arith.constant 0 : i32
    return %c0_i32, %c0_i32_0 : i32, i32
  }
  func.func @transform_3(%arg0: i32, %arg1: i32) -> (i32, i32) {
    %c0_i32 = arith.constant 0 : i32
    %c0_i32_0 = arith.constant 0 : i32
    %c0_i32_1 = arith.constant 0 : i32
    return %c0_i32, %c0_i32_0 : i32, i32
  }
  func.func @transform_4(%arg0: i32, %arg1: i32) -> (i32, i32, i32) {
    %c0_i32 = arith.constant 0 : i32
    %c0_i32_0 = arith.constant 0 : i32
    return %arg0, %c0_i32, %arg1 : i32, i32, i32
  }
}

</mosaic_0001>

<bundles_post_ra>
// kernel: tpu_custom_call.1
= control target key start
LH: loop header
LB: loop body
LE: loop exit
PB: predicated region body
PF: predicated region fallthrough
CT: control target
= control target key end

     0   :  { %9 = vsyncpa [#allocation3], 0  ;;  %s749_s0 = inlined_call_operand.vmem [shape: f32[2,4,128], index: 0, kind: input, shape index: {}]   ;;  %s750_s1 = inlined_call_operand.vmem [shape: f32[2,1,4,2], index: 1, kind: input, shape index: {}]   ;;  %s751_s2 = inlined_call_operand.vmem [shape: bf16[8,12], index: 2, kind: input, shape index: {}]   ;;  %s752_s3 = inlined_call_operand.vmem [shape: f32[8,1], index: 3, kind: input, shape index: {}]   ;;  %s753_s4 = inlined_call_operand.hbm [shape: f32[2,8,128], index: 4, kind: output, shape index: {}]  }
   0x1   :  { %11 = vsyncpa [#allocation3 + $0x1], 0  ;;  %s628_s15 = smov 0   ;;  %s630_s16 = smov 0  }
   0x2   :  { %s632_s17 = smov 0   ;;  %s634_s18 = smov 0  }
   0x3   :  { %s636_s19 = smov 0   ;;  %s638_s20 = smov 0  }
   0x4 LB: > { %s432_s21 = sadd.s32 4294967295, %s594_s20   ;;  %s433_s22 = sadd.s32 4294967294, %s594_s20   ;;  %s594_s20 = sphi %s638_s20, %s17_s20   ;;  %s590_s19 = sphi %s636_s19, %s760_s19   ;;  %s586_s18 = sphi %s634_s18, %s759_s18   ;;  %s582_s17 = sphi %s632_s17, %s758_s17   ;;  %s578_s16 = sphi %s630_s16, %s757_s16   ;;  %s574_s15 = sphi %s628_s15, %s756_s15  }
   0x5   : > { %s29_s23 = sadd.s32 1, %s590_s19  ;;  %s136_s24 = sadd.s32 1, %s582_s17 }
   0x6   : > { %p31_p0 = scmp.ge.s32.totalorder %s29_s23, 2  ;;  %p146_p1 = scmp.ne.s32.totalorder %s582_s17, %s578_s16 }
   0x7   : > { %p147_p2 = scmp.eq.s32.totalorder %s432_s21, 1  ;;  %p152_p3 = scmp.ne.s32.totalorder %s578_s16, %s574_s15 }
   0x8   : > { %s762_s23 = smov (%p31_p0, %s29_s23), 0  ;;  %p153_p5 = scmp.eq.s32.totalorder %s433_s22, 1 }
   0x9   : > { %p668_p4 = por %p147_p2, %p146_p1  ;;  %s131_s26 = ssub.s32 %s590_s19, %s762_s23 }
   0xa   : > { %p436_p6 = scmp.ge.s32.totalorder %s594_s20, 1  ;;  %p134_p7 = scmp.eq.s32.totalorder %s131_s26, 0 }
   0xb   : > { %p675_p8 = por %p153_p5, %p152_p3  ;;  %p197_p9 = scmp.lt.s32.totalorder %s594_s20, 3 }
   0xc   : > { %s681_s28 = scalar_select %p134_p7, %s582_s17, %s136_s24  }
   0xd   : > { %p198_p10 = pnand %p436_p6, %p197_p9 }
   0xe   : > { %p232_p11 = scmp.lt.s32.totalorder (!%p198_p10), %s586_s18, 1  ;;  %v596_v0 = vmov (!%p198_p10), 0.0   ;;  %vm597_vm0 = vmmov (!%p198_p10), 0   ;;  %v598_v7 = vmov (!%p198_p10), 0   ;;  %s599_s11 = smov (!%p198_p10), 1   ;;  %v276_v8 = vld [vmem:[%s752_s3] sm:$0xff] (!%p198_p10) }
   0xf   : > { %201 = sbr.rel (%p198_p10) target bundleno = 384 (0x180), region = 36  ;;  %447 = vmatprep.subr.bf16.mxu0 (!%p198_p10), %v596_v0  ;;  %449 = vmatprep.mubr.msk.bf16.mxu0 (!%p198_p10), %vm597_vm0, %v596_v0  ;;  %s600_s12 = smov (!%p198_p10), 126   ;;  %vm259_vm3 = vcmask (!%p198_p10), 7168   ;;  %vm268_vm4 = vcmask (!%p198_p10), 1039360   ;;  %vm272_vm5 = vcmask (!%p198_p10), 1043456   ;;  %vm286_vm6 = vcmask (!%p198_p10), 1045504  }
  0x10   : > { %514 = vset.pattern.permute.xlu1 (!%p198_p10), %v598_v7  ;;  %515 = vset.pattern.permute.xlu0 (!%p198_p10), %v598_v7  ;;  %s601_s21 = smov (!%p198_p10), 127   ;;  %v275_v18 = vld [vmem:[%s751_s2] sm:$0xf] (!%p198_p10)  ;;  %vm282_vm7 = vcmask (!%p198_p10), 97280   ;;  %s229_s26 = sand.u32 (!%p198_p10), 1, %s578_s16  }
  0x16   : > { %s233_s29 = scalar_select %p232_p11, %s586_s18, 1 }
  0x18   : > { %s438_s30 = sshll.u32 %s233_s29, 2  ;;  %s437_s29 = sshll.u32 %s229_s26, 3 }
  0x19   : > { %s238_s7 = scalar_lea.vmem %s749_s0, %s438_s30  ;;  %s245_s10 = scalar_lea.vmem %s750_s1, %s438_s30 }
  0x1a   : > { %v247_v1 = vld [vmem:[%s238_s7] sm:$0xf]  ;;  %s442_s30 = sshll.u32 %s586_s18, 7  ;;  %s231_s5 = scalar_lea.vmem [#allocation2], %s437_s29 }
  0x1b   : > { %v251_v2 = vld [vmem:[%s245_s10] sm:$0xf]  ;;  %vm248_vm1 = vcmp.gt.f32.partialorder %v247_v1, 0.0  ;;  %v249_v3 = vmul.f32 0.01, %v247_v1  ;;  %s346_s6 = sshll.u32 %s231_s5, 4  ;;  %s702_s9 = scalar_lea.hbm %s753_s4, %s442_s30  ;;  %s704_s6 = int_to_ptr.vmem [resolvable:$true] %s346_s6 }
  0x1c   : > { %vm252_vm2 = vcmp.gt.f32.partialorder %v251_v2, 0.0  ;;  %v253_v4 = vmul.f32 0.01, %v251_v2  ;;  %s332_s10 = scalar_lea.sflag [#allocation3], %s229_s26  ;;  %s516_s18 = scalar_lea.vmem %s704_s6, 128 }
  0x1d   : > { %v250_v5 = vsel %vm248_vm1, %v247_v1, %v249_v3  ;;  %p517_p12 = scmp.ne.s32.totalorder %s704_s6, %s516_s18 }
  0x1e   : > { %v254_v6 = vsel %vm252_vm2, %v251_v2, %v253_v4  ;;  %256 = vrot.lane.b32.xlu0 %v250_v5, %s599_s11  ;;  %v270_v10 = vrot.slane %v250_v5, 4  ;;  %s602_s11 = smov [#allocation2]  }
  0x1f   : > { %265 = vrot.lane.b32.xlu1 %v254_v6, %s600_s12  ;;  %p518_p13 = pnand %p517_p12, %p668_p4  ;;  %s520_s12 = sshll.u32 %s602_s11, 4  ;;  %s521_s12 = int_to_ptr.vmem [resolvable:$false] %s520_s12 }
  0x20   : > { %s522_s13 = scalar_lea.vmem %s521_s12, 256  ;;  %p523_p1 = scmp.lt.s32.totalorder %s704_s6, %s521_s12 }
  0x21   : > { %p519_p0 = pneg %p518_p13  ;;  %p524_p2 = scmp.lt.s32.totalorder %s522_s13, %s516_s18 }
  0x22   : > { %261 = vrot.lane.b32.xlu0 %v250_v5, %s601_s21 }
  0x23   : > { %279 = vperm.xlu1 %514, %v276_v8   ;;  %p525_p3 = por %p524_p2, %p523_p1 }
  0x25   : > { %p526_p5 = pnand %p525_p3, %p519_p0 }
  0x90   : > { %v257_v9 = vpop.permute.xlu0 %256 }
  0x91   : > { %v260_v11 = vsel %vm259_vm3, %v254_v6, %v257_v9  ;;  %v266_v12 = vpop.permute.xlu1 %265 }
  0x92   : > { %v273_v15 = vsel %vm272_vm5, %v260_v11, %v270_v10 }
  0x94   : > { %v262_v13 = vpop.permute.xlu0 %261 }
  0x95   : > { %v269_v14 = vsel %vm268_vm4, %v262_v13, %v266_v12 }
  0x96   : > { %v274_v16 = vpack.c.bf16 %v269_v14, %v273_v15 }
  0x98   : > { %v288_v17 = vsel %vm286_vm6, %v274_v16, 0 }
  0x99   : > { %448 = vmatpush3.bf16.msra.mxu0 %v288_v17 }
  0x9c   : > { %450 = vmatmul.mubr.msk.bf16.vlgmr.msra.gmra.mrb[0].mxu0 %vm282_vm7, %v275_v18 }
  0xa2   : > { %v280_v19 = vpop.permute.xlu1 %279 }
 0x16f   : > { %v324_v20 = vpop.f32.mrb[0].mxu0 }
 0x170   : > { %v325_v21 = vadd.f32 %v324_v20, %v280_v19  ;;  %v451_v22 = vpop.f32.mrb[1].mxu0 }
 0x171   : > { %v327_v23 = vpop.f32.mrb[2].mxu0 }
 0x172   : > { %330 = vst [vmem:[%s231_s5] sm:$0xff] %v325_v21  ;;  %v452_v24 = vpop.f32.mrb[3].mxu0 }
 0x173   : > { %529 = shalt.err (!%p526_p5)
}
 0x174   : > { %s530_s14 = scalar_lea.hbm %s702_s9, 128  ;;  %s534_s24 = scalar_lea.hbm %s753_s4, 256 }
 0x175   : > { %p531_p6 = scmp.ne.s32.totalorder %s702_s9, %s530_s14  ;;  %p535_p10 = scmp.lt.u32.totalorder %s702_s9, %s753_s4 }
 0x176   : > { %p536_p11 = scmp.lt.u32.totalorder %s534_s24, %s530_s14  ;;  %p538_p13 = scmp.lt.u32.totalorder %s530_s14, %s702_s9 }
 0x177   : > { %p532_p7 = pnand %p531_p6, %p668_p4 }
 0x178   : > { %p537_p12 = por %p536_p11, %p535_p10 }
 0x179   : > { %p533_p9 = pneg %p532_p7 }
 0x17a   : > { %p539_p0 = por %p538_p13, %p537_p12 }
 0x17c   : > { %p540_p1 = pnand %p539_p0, %p533_p9 }
 0x17e   : > { %543 = shalt.err (!%p540_p1)
}
 0x17f   : > { %453 = dma.vmem_to_hbm [thread:$0]  (%p668_p4), %s704_s6, 128, %s702_s9, %s332_s10  }
 0x180 PF: > { %p459_p2 = scmp.ge.s32.totalorder %s594_s20, 2  ;;  %s358_s30 = sand.u32 1, %s574_s15  }
 0x181   : > { %s359_s5 = scalar_lea.sflag [#allocation3], %s358_s30 }
 0x182   : > { %p456_p3 = pnand %p459_p2, %p675_p8 }
 0x184   : > { %569 = dma.done.wait (!%p456_p3), %s359_s5, 128  }
 0x185   : > { %571 = vsyncadd (!%p456_p3), %s359_s5, 4294967168  ;;  %s17_s20 = sadd.s32 1, %s594_s20   ;;  %s756_s15 = smov %s578_s16 }
 0x186   : > { %p14_p5 = scmp.ge.s32.totalorder %s17_s20, 4   ;;  %s757_s16 = smov %s582_s17 }
 0x187   : > { %s758_s17 = smov %s681_s28  ;;  %s759_s18 = smov %s590_s19 }
 0x188   : > { %s760_s19 = smov %s762_s23  ;;  %16 = sbr.rel (!%p14_p5) target bundleno = 4 (0x4), region = 74 }
 0x18f   :  { %364 = vsyncpa [#allocation3], 1 }
 0x190   :  { %366 = vsyncpa [#allocation3 + $0x1], 1 }

</bundles_post_ra>
